<compile_context>
chip_gen: v5e
topology: v5e:2x2
jax: 0.10.0
libtpu: 0.0.40
codegen_flags: <defaults>
</compile_context>

<pallas_src>
import jax
import jax.numpy as jnp
from jax.experimental import pallas as pl
from jax.experimental.pallas import tpu as pltpu

K_IN = 28 * 28          # 784 (already a multiple of 8 -> sublane friendly)
HID = 128
N_OUT = 10
OUT_PAD = 128           # lane-dense output width (avoids masked vst.msk)
MAX_TM = 1024           # per-step batch tile cap (>=512 already ~85% of HBM roofline)


def _round_up(x, m):
    return (x + m - 1) // m * m


def _mlp_kernel(x_ref, w1_ref, b1_ref, w2_ref, b2_ref, o_ref):
    # x_ref : (TM, 784)  f32   (cast to bf16 in VMEM -> no extra HBM bytes)
    # w1_ref: (784, 128) bf16  (resident across the whole grid)
    # b1_ref: (1, 128)   f32
    # w2_ref: (128, 128) bf16  (zero-padded lanes 10..127, resident)
    # b2_ref: (1, 128)   f32   (zero-padded)
    # o_ref : (TM, 128)  f32   (lane-dense, unmasked stores)
    x = x_ref[...].astype(jnp.bfloat16)
    h = jnp.dot(x, w1_ref[...], preferred_element_type=jnp.float32)
    h = jnp.maximum(h + b1_ref[...], 0.0)                       # bias + ReLU
    out = jnp.dot(h.astype(jnp.bfloat16), w2_ref[...],
                  preferred_element_type=jnp.float32)
    o_ref[...] = (out + b2_ref[...]).astype(o_ref.dtype)


def prepare_params(w1, b1, w2, b2):
    """One-time weight prep (hoisted out of the per-call hot path).

    w1: (784, 128), b1: (1, 128) or (128,), w2: (128, 10), b2: (1, 10) or (10,)
    (weights stored transposed relative to torch.nn.Linear).
    """
    w1p = w1.astype(jnp.bfloat16)                                     # (784, 128)
    b1p = b1.reshape(1, HID).astype(jnp.float32)                      # (1, 128)
    w2p = jnp.pad(w2.astype(jnp.bfloat16),
                  ((0, 0), (0, OUT_PAD - N_OUT)))                     # (128, 128)
    b2p = jnp.pad(b2.reshape(1, N_OUT).astype(jnp.float32),
                  ((0, 0), (0, OUT_PAD - N_OUT)))                     # (1, 128)
    return w1p, b1p, w2p, b2p


def simple_net_forward(x, params, *, max_tm=MAX_TM):
    """x: (N, 1, 28, 28) or (N, 784) float32 -> logits (N, 10) float32."""
    w1p, b1p, w2p, b2p = params
    x2d = x.reshape(-1, K_IN).astype(jnp.float32)
    n = x2d.shape[0]

    # --- batch tiling: bounded padding, >=2 grid steps when possible -------
    n_pad8 = _round_up(max(n, 8), 8)
    # >=2 tiles lets v7x shard the "parallel" batch axis over both TCs.
    num_tiles = max(2, pl.cdiv(n_pad8, max_tm)) if n_pad8 >= 16 else 1
    tm = _round_up(pl.cdiv(n_pad8, num_tiles), 8)
    grid_m = pl.cdiv(n_pad8, tm)
    n_pad = grid_m * tm                     # waste bounded by < 8*grid_m (+7) rows

    # Row-only padding (same dtype, no K pad, no cast) -- a no-op for batches
    # that already divide into sublane-aligned tiles.
    x_in = x2d if n_pad == n else jnp.pad(x2d, ((0, n_pad - n), (0, 0)))

    flops = 2 * n_pad * (K_IN * HID + HID * OUT_PAD)
    bytes_accessed = (n_pad * K_IN * 4            # x read (f32, once)
                      + w1p.size * 2 + w2p.size * 2
                      + b1p.size * 4 + b2p.size * 4
                      + n_pad * OUT_PAD * 4)      # padded f32 writeback

    out = pl.pallas_call(
        _mlp_kernel,
        out_shape=jax.ShapeDtypeStruct((n_pad, OUT_PAD), jnp.float32),
        grid_spec=pltpu.PrefetchScalarGridSpec(
            num_scalar_prefetch=0,
            grid=(grid_m,),
            in_specs=[
                pl.BlockSpec((tm, K_IN), lambda i: (i, 0)),       # x tile (streamed f32)
                pl.BlockSpec((K_IN, HID), lambda i: (0, 0)),      # w1 (resident bf16)
                pl.BlockSpec((1, HID), lambda i: (0, 0)),         # b1
                pl.BlockSpec((HID, OUT_PAD), lambda i: (0, 0)),   # w2 (padded, resident)
                pl.BlockSpec((1, OUT_PAD), lambda i: (0, 0)),     # b2 (padded)
            ],
            out_specs=pl.BlockSpec((tm, OUT_PAD), lambda i: (i, 0)),
        ),
        compiler_params=pltpu.CompilerParams(
            dimension_semantics=("parallel",),    # v7x: shard batch over 2 TCs
            vmem_limit_bytes=32 * 1024 * 1024,    # safe vs v7x 64 MiB physical VMEM
        ),
        cost_estimate=pl.CostEstimate(
            flops=flops, transcendentals=0, bytes_accessed=bytes_accessed),
    )(x_in, w1p, b1p, w2p, b2p)

    # Slice off padded rows / lanes; fuses into the downstream consumer.
    return out[:n, :N_OUT]


def init_params(key):
    """Deterministic init mimicking torch.nn.Linear default (U[-1/sqrt(fan_in), +])."""
    k1, k2, k3, k4 = jax.random.split(key, 4)
    bound1 = 1.0 / jnp.sqrt(K_IN)
    bound2 = 1.0 / jnp.sqrt(HID)
    # stored as (in_features, out_features) == torch weight.T
    w1 = jax.random.uniform(k1, (K_IN, HID), jnp.float32, -bound1, bound1)
    b1 = jax.random.uniform(k2, (1, HID), jnp.float32, -bound1, bound1)
    w2 = jax.random.uniform(k3, (HID, N_OUT), jnp.float32, -bound2, bound2)
    b2 = jax.random.uniform(k4, (1, N_OUT), jnp.float32, -bound2, bound2)
    return w1, b1, w2, b2


def reference_forward(x, w1, b1, w2, b2):
    x2d = x.reshape(-1, K_IN)
    h = jnp.maximum(x2d @ w1 + b1, 0.0)
    return h @ w2 + b2


# TODO(synk): the DDP / DistributedSampler / optimizer loop of the original
# script is multi-host orchestration, not a Pallas kernel; only forward() is
# implemented here.

if __name__ == "__main__":
    key = jax.random.PRNGKey(0)
    kx, kp = jax.random.split(key)

    # 40 is deliberately not a multiple of any nice tile size so the bounded
    # batch-padding path and the >=2-step grid are both exercised.
    x = jax.random.normal(kx, (40, 1, 28, 28), dtype=jnp.float32)
    w1, b1, w2, b2 = init_params(kp)
    params = prepare_params(w1, b1, w2, b2)       # one-time weight prep

    out = simple_net_forward(x, params)
    out = jax.block_until_ready(out)

    ref = reference_forward(x, w1, b1, w2, b2)
    assert out.shape == (40, N_OUT), out.shape
    # bf16 MXU streaming (f32 accumulation) vs full-f32 reference: loose tolerance.
    assert jnp.allclose(out, ref, atol=2e-2, rtol=2e-2), "mismatch vs reference"

    print("KERNEL_OK")
</pallas_src>

<mosaic_0001>
module attributes {stable_mosaic.version = 11 : i64} {
  func.func @_mlp_kernel(%arg0: i32, %arg1: memref<24x784xf32, #tpu.memory_space<vmem>>, %arg2: memref<784x128xbf16, #tpu.memory_space<vmem>>, %arg3: memref<1x128xf32, #tpu.memory_space<vmem>>, %arg4: memref<128x128xbf16, #tpu.memory_space<vmem>>, %arg5: memref<1x128xf32, #tpu.memory_space<vmem>>, %arg6: memref<24x128xf32, #tpu.memory_space<vmem>>) attributes {dimension_semantics = [#tpu.dimension_semantics<parallel>], iteration_bounds = array<i64: 2>, scalar_prefetch = 0 : i64, scratch_operands = 0 : i64, tpu.core_type = #tpu.core_type<tc>, window_params = [{transform_indices = @transform_0, window_bounds = array<i64: 24, 784>}, {pipeline_mode = #tpu.pipeline_mode<synchronous>, transform_indices = @transform_1, window_bounds = array<i64: 784, 128>}, {pipeline_mode = #tpu.pipeline_mode<synchronous>, transform_indices = @transform_2, window_bounds = array<i64: 1, 128>}, {pipeline_mode = #tpu.pipeline_mode<synchronous>, transform_indices = @transform_3, window_bounds = array<i64: 128, 128>}, {pipeline_mode = #tpu.pipeline_mode<synchronous>, transform_indices = @transform_4, window_bounds = array<i64: 1, 128>}, {transform_indices = @transform_5, window_bounds = array<i64: 24, 128>}]} {
    %c0 = arith.constant 0 : index
    %c0_0 = arith.constant 0 : index
    %0 = vector.load %arg1[%c0, %c0_0] : memref<24x784xf32, #tpu.memory_space<vmem>>, vector<24x784xf32>
    %1 = arith.truncf %0 : vector<24x784xf32> to vector<24x784xbf16>
    %c0_1 = arith.constant 0 : index
    %c0_2 = arith.constant 0 : index
    %2 = vector.load %arg2[%c0_1, %c0_2] : memref<784x128xbf16, #tpu.memory_space<vmem>>, vector<784x128xbf16>
    %cst = arith.constant dense<0.000000e+00> : vector<24x128xf32>
    %3 = tpu.matmul %1, %2, %cst {dimension_numbers = #tpu.dot_dimension_numbers<[1], [0], [0], [1], [0, 0, 1, 1], [], []>} : vector<24x784xbf16>, vector<784x128xbf16>, vector<24x128xf32> -> vector<24x128xf32>
    %c0_3 = arith.constant 0 : index
    %c0_4 = arith.constant 0 : index
    %4 = vector.load %arg3[%c0_3, %c0_4] : memref<1x128xf32, #tpu.memory_space<vmem>>, vector<1x128xf32>
    %5 = vector.broadcast %4 : vector<1x128xf32> to vector<24x128xf32>
    %6 = arith.addf %3, %5 : vector<24x128xf32>
    %cst_5 = arith.constant 0.000000e+00 : f32
    %7 = vector.broadcast %cst_5 : f32 to vector<24x128xf32>
    %8 = arith.maximumf %6, %7 : vector<24x128xf32>
    %9 = arith.truncf %8 : vector<24x128xf32> to vector<24x128xbf16>
    %c0_6 = arith.constant 0 : index
    %c0_7 = arith.constant 0 : index
    %10 = vector.load %arg4[%c0_6, %c0_7] : memref<128x128xbf16, #tpu.memory_space<vmem>>, vector<128x128xbf16>
    %cst_8 = arith.constant dense<0.000000e+00> : vector<24x128xf32>
    %11 = tpu.matmul %9, %10, %cst_8 {dimension_numbers = #tpu.dot_dimension_numbers<[1], [0], [0], [1], [0, 0, 1, 1], [], []>} : vector<24x128xbf16>, vector<128x128xbf16>, vector<24x128xf32> -> vector<24x128xf32>
    %c0_9 = arith.constant 0 : index
    %c0_10 = arith.constant 0 : index
    %12 = vector.load %arg5[%c0_9, %c0_10] : memref<1x128xf32, #tpu.memory_space<vmem>>, vector<1x128xf32>
    %13 = vector.broadcast %12 : vector<1x128xf32> to vector<24x128xf32>
    %14 = arith.addf %11, %13 : vector<24x128xf32>
    %c0_11 = arith.constant 0 : index
    %c0_12 = arith.constant 0 : index
    %15 = vector.load %arg6[%c0_11, %c0_12] : memref<24x128xf32, #tpu.memory_space<vmem>>, vector<24x128xf32>
    tpu.vector_store %arg6[%c0_11, %c0_12], %14 {strides = array<i32>} : memref<24x128xf32, #tpu.memory_space<vmem>>, vector<24x128xf32>,
    return
  }
  func.func @transform_0(%arg0: i32) -> (i32, i32) {
    %c0_i32 = arith.constant 0 : i32
    %c0_i32_0 = arith.constant 0 : i32
    return %arg0, %c0_i32 : i32, i32
  }
  func.func @transform_1(%arg0: i32) -> (i32, i32) {
    %c0_i32 = arith.constant 0 : i32
    %c0_i32_0 = arith.constant 0 : i32
    %c0_i32_1 = arith.constant 0 : i32
    return %c0_i32, %c0_i32_0 : i32, i32
  }
  func.func @transform_2(%arg0: i32) -> (i32, i32) {
    %c0_i32 = arith.constant 0 : i32
    %c0_i32_0 = arith.constant 0 : i32
    %c0_i32_1 = arith.constant 0 : i32
    return %c0_i32, %c0_i32_0 : i32, i32
  }
  func.func @transform_3(%arg0: i32) -> (i32, i32) {
    %c0_i32 = arith.constant 0 : i32
    %c0_i32_0 = arith.constant 0 : i32
    %c0_i32_1 = arith.constant 0 : i32
    return %c0_i32, %c0_i32_0 : i32, i32
  }
  func.func @transform_4(%arg0: i32) -> (i32, i32) {
    %c0_i32 = arith.constant 0 : i32
    %c0_i32_0 = arith.constant 0 : i32
    %c0_i32_1 = arith.constant 0 : i32
    return %c0_i32, %c0_i32_0 : i32, i32
  }
  func.func @transform_5(%arg0: i32) -> (i32, i32) {
    %c0_i32 = arith.constant 0 : i32
    %c0_i32_0 = arith.constant 0 : i32
    return %arg0, %c0_i32 : i32, i32
  }
}

</mosaic_0001>

<bundles_post_ra>
// kernel: tpu_custom_call.1
= control target key start
LH: loop header
LB: loop body
LE: loop exit
PB: predicated region body
PF: predicated region fallthrough
CT: control target
= control target key end

     0   :  { %s1799_s0 = inlined_call_operand.hbm [shape: f32[48,784], index: 0, kind: input, shape index: {}]   ;;  %s1800_s1 = inlined_call_operand.hbm [shape: bf16[784,128], index: 1, kind: input, shape index: {}]   ;;  %s1801_s2 = inlined_call_operand.vmem [shape: f32[1,128], index: 2, kind: input, shape index: {}]   ;;  %s1802_s3 = inlined_call_operand.hbm [shape: bf16[128,128], index: 3, kind: input, shape index: {}]   ;;  %s1803_s4 = inlined_call_operand.vmem [shape: f32[1,128], index: 4, kind: input, shape index: {}]   ;;  %s1804_s5 = inlined_call_operand.hbm [shape: f32[48,128], index: 5, kind: output, shape index: {}]  }
   0x1   :  { %1805 = sst [smem:[#allocation12_spill]] %s1800_s1 }
   0x2   :  { %10 = vsyncpa [#allocation3], 0 }
   0x3   :  { %12 = vsyncpa [#allocation3 + $0x1], 0 }
   0x4   :  { %13 = vsyncpa [#allocation6], 0 }
   0x5   :  { %14 = vsyncpa [#allocation4], 0 }
   0x6   :  { %16 = vsyncpa [#allocation4 + $0x1], 0  ;;  %s1628_s18 = smov 0   ;;  %s1630_s19 = smov 0  }
   0x7   :  { %s1632_s20 = smov 0   ;;  %s1634_s21 = smov 0  }
   0x8 LB: > { %s1649_s22 = sadd.s32 4294967295, %s1588_s21   ;;  %s1048_s23 = sadd.s32 4294967294, %s1588_s21   ;;  %s1588_s21 = sphi %s1634_s21, %s1816_s21   ;;  %s1584_s20 = sphi %s1632_s20, %s1815_s20   ;;  %s1580_s19 = sphi %s1630_s19, %s1814_s19   ;;  %s1576_s18 = sphi %s1628_s18, %s1813_s18  }
   0x9   : > { %p42_p0 = scmp.ne.s32.totalorder %s1580_s19, %s1576_s18  ;;  %p43_p1 = scmp.eq.s32.totalorder %s1649_s22, 0 }
   0xa   : > { %p150_p2 = scmp.eq.s32.totalorder %s1649_s22, 1  ;;  %p156_p3 = scmp.eq.s32.totalorder %s1048_s23, 1 }
   0xb   : > { %p1658_p4 = por %p43_p1, %p42_p0  ;;  %p1049_p5 = scmp.ge.s32.totalorder %s1588_s21, 1 }
   0xc   : > { %p1663_p6 = por %p156_p3, %p42_p0  ;;  %p163_p7 = scmp.lt.s32.totalorder %s1588_s21, 3 }
   0xd   : > { %s1808_s1 = sld [smem:[#allocation12_spill]]  ;;  %s1590_s30 = smov [#allocation5]  }
   0xe   : > { %p1671_p8 = pnand %p1049_p5, %p163_p7  ;;  %s176_s6 = sshll.u32 %s1590_s30, 4  ;;  %s177_s6 = int_to_ptr.vmem [resolvable:$true] %s176_s6 }
   0xf   : > { %s191_s9 = sshll.u32 %s1802_s3, 4  ;;  %s1591_s10 = smov 64   ;;  %s192_s9 = int_to_ptr.hbm [resolvable:$true] %s191_s9 }
  0x10   : > { %p1364_p9 = pneg %p1671_p8  ;;  %s1592_s11 = smov 4  }
  0x11   : > { %s1593_s12 = smov [#allocation7]   ;;  %s1684_s14 = sadd.s32 1, %s1588_s21  }
  0x12   : > { %p1365_p10 = pnand %p1364_p9, %p43_p1  ;;  %s193_s13 = sshll.u32 %s1593_s12, 4  ;;  %s194_s13 = int_to_ptr.vmem [resolvable:$true] %s193_s13 }
  0x13   : > { %s174_s28 = sshll.u32 %s1808_s1, 4  ;;  %s26_s15 = ssub.s32 %s1588_s21, %s1684_s14  ;;  %s175_s28 = int_to_ptr.hbm [resolvable:$true] %s174_s28 }
  0x14   : > { %1367 = dma.hbm_to_vmem [thread:$0]  (!%p1365_p10), %s175_s28, 6272, %s177_s6, [#allocation6], %s1591_s10, %s1591_s10, %s1592_s11  }
  0x15   : > { %1370 = dma.hbm_to_vmem [thread:$0]  (!%p1365_p10), %s192_s9, 1024, %s194_s13, [#allocation6], %s1591_s10, %s1591_s10, %s1592_s11  }
  0x16   : > { %s29_s16 = sadd.s32 1, %s1584_s20  ;;  %p27_p12 = scmp.eq.s32.totalorder %s26_s15, 0 }
  0x17   : > { %p36_p13 = scmp.ne.s32.totalorder %s1584_s20, %s1580_s19  ;;  %p37_p0 = scmp.eq.s32.totalorder %s1588_s21, 0 }
  0x18   : > { %p1381_p3 = scmp.lt.s32.totalorder %s1588_s21, 2  ;;  %s210_s26 = sand.u32 1, %s1584_s20  }
  0x19   : > { %s1694_s17 = scalar_select %p27_p12, %s1584_s20, %s29_s16  }
  0x1a   : > { %p38_p5 = por %p37_p0, %p36_p13  ;;  %p1698_p7 = por %p150_p2, %p36_p13 }
  0x1b   : > { %s1382_s27 = smul.u32 168, %s1588_s21  ;;  %s211_s12 = scalar_lea.sflag [#allocation3], %s210_s26 }
  0x1c   : > { %s1348_s28 = smul.u32 168, %s210_s26  ;;  %p1707_p9 = pnand %p1381_p3, %p38_p5 }
  0x1d   : > { %s220_s7 = scalar_lea.hbm %s1799_s0, %s1382_s27  ;;  %s1495_s30 = scalar_lea.hbm %s1799_s0, 336 }
  0x1e   : > { %s221_s9 = sshll.u32 %s220_s7, 4  ;;  %s214_s10 = scalar_lea.vmem [#allocation2], %s1348_s28  ;;  %s222_s9 = int_to_ptr.hbm [resolvable:$true] %s221_s9 }
  0x1f   : > { %s223_s11 = sshll.u32 %s214_s10, 4  ;;  %s1488_s13 = sshra.s32 %s222_s9, 4  ;;  %s224_s11 = int_to_ptr.vmem [resolvable:$true] %s223_s11  ;;  %s1489_s13 = int_to_ptr.hbm [resolvable:$true] %s1488_s13 }
  0x20   : > { %s1490_s15 = scalar_lea.hbm %s1489_s13, 168  ;;  %p1492_p10 = pneg %p1707_p9 }
  0x21   : > { %p1491_p2 = scmp.ne.s32.totalorder %s1489_s13, %s1490_s15  ;;  %p1496_p0 = scmp.lt.s32.totalorder %s1489_s13, %s1799_s0 }
  0x22   : > { %p1497_p3 = scmp.lt.s32.totalorder %s1495_s30, %s1490_s15 }
  0x23   : > { %p1493_p12 = pnand %p1492_p10, %p1491_p2 }
  0x24   : > { %p1498_p5 = por %p1497_p3, %p1496_p0 }
  0x25   : > { %p1494_p13 = pneg %p1493_p12 }
  0x27   : > { %p1499_p11 = pnand %p1498_p5, %p1494_p13 }
  0x29   : > { %1502 = shalt.err (!%p1499_p11)
}
  0x2a   : > { %s1594_s26 = smov 896   ;;  %s1595_s28 = smov 56  }
  0x2b   : > { %1374 = dma.hbm_to_vmem [thread:$0]  (!%p1707_p9), %s222_s9, 2688, %s224_s11, %s211_s12, %s1594_s26, %s1594_s26, %s1595_s28  }
  0x2c   : > { %235 = sbr.rel (%p1671_p8) target bundleno = 420 (0x1a4), region = 40  ;;  %s1724_s7 = sand.u32 (!%p1671_p8), 1, %s1580_s19  }
  0x2d   : > { %s1350_s1 = smul.u32 (!%p1671_p8), 168, %s1724_s7  ;;  %s238_s10 = scalar_lea.sflag (!%p1671_p8), [#allocation3], %s1724_s7 }
  0x2f   : > { %s1728_s13 = scalar_lea.vmem (!%p1671_p8), [#allocation2], %s1350_s1 }
  0x31   : > { %1563 = dma.done.wait (%p1658_p4), %s238_s10, 2688  }
  0x32   : > { %1565 = vsyncadd (%p1658_p4), %s238_s10, 4294964608 }
  0x33   : > { %1567 = dma.done.wait (%p43_p1), [#allocation6], 7296  }
  0x34   : > { %1569 = vsyncadd (%p43_p1), [#allocation6], 4294960000  ;;  %v1297_v0 = vld [vmem:[#allocation5 + $0x38] sm:$0xff]  ;;  %v1296_v4 = vld [vmem:[#allocation5 + $0x30] sm:$0xff]  ;;  %vm713_vm0 = vcmask 130048   ;;  %s1351_s8 = smul.u32 24, %s1724_s7 }
  0x35   : > { %v1305_v1 = vld [vmem:[#allocation5 + $0x78] sm:$0xff]  ;;  %720 = vmatpush.bf16.msra.mxu0 %v1297_v0  ;;  %v1304_v5 = vld [vmem:[#allocation5 + $0x70] sm:$0xff]  ;;  %v1295_v8 = vld [vmem:[#allocation5 + $0x28] sm:$0xff]  ;;  %s1347_s15 = smul.u32 24, %s1649_s22  ;;  %s941_s28 = scalar_lea.sflag [#allocation4], %s1724_s7 }
  0x36   : > { %v1313_v2 = vld [vmem:[#allocation5 + $0xb8] sm:$0xff]  ;;  %738 = vmatpush.bf16.msra.mxu1 %v1305_v1  ;;  %v1312_v6 = vld [vmem:[#allocation5 + $0xb0] sm:$0xff]  ;;  %v1303_v9 = vld [vmem:[#allocation5 + $0x68] sm:$0xff]  ;;  %s278_s12 = scalar_lea.vmem [#allocation8], %s1351_s8  ;;  %s1538_s24 = scalar_lea.hbm %s1804_s5, 48 }
  0x37   : > { %v1321_v3 = vld [vmem:[#allocation5 + $0xf8] sm:$0xff]  ;;  %756 = vmatpush.bf16.msra.mxu2 %v1313_v2  ;;  %v1320_v7 = vld [vmem:[#allocation5 + $0xf0] sm:$0xff]  ;;  %v1311_v10 = vld [vmem:[#allocation5 + $0xa8] sm:$0xff]  ;;  %s952_s30 = scalar_lea.hbm %s1804_s5, %s1347_s15  ;;  %s953_s6 = sshll.u32 %s278_s12, 4  ;;  %s954_s6 = int_to_ptr.vmem [resolvable:$true] %s953_s6 }
  0x38   : > { %774 = vmatpush.bf16.msra.mxu3 %v1321_v3  ;;  %v1319_v11 = vld [vmem:[#allocation5 + $0xe8] sm:$0xff]  ;;  %v1294_v12 = vld [vmem:[#allocation5 + $0x20] sm:$0xff]  ;;  %v1293_v16 = vld [vmem:[#allocation5 + $0x18] sm:$0xff]  ;;  %s955_s26 = sshll.u32 %s952_s30, 4  ;;  %s956_s26 = int_to_ptr.hbm [resolvable:$true] %s955_s26 }
  0x39   : > { %721 = vmatpush.bf16.msra.mxu0 %v1296_v4  ;;  %v1302_v13 = vld [vmem:[#allocation5 + $0x60] sm:$0xff]  ;;  %v1301_v17 = vld [vmem:[#allocation5 + $0x58] sm:$0xff]  ;;  %v1292_v20 = vld [vmem:[#allocation5 + $0x10] sm:$0xff]  ;;  %s1532_s1 = sshra.s32 %s956_s26, 4  ;;  %s1533_s1 = int_to_ptr.hbm [resolvable:$true] %s1532_s1 }
  0x3a   : > { %739 = vmatpush.bf16.msra.mxu1 %v1304_v5  ;;  %v1310_v14 = vld [vmem:[#allocation5 + $0xa0] sm:$0xff]  ;;  %v1309_v18 = vld [vmem:[#allocation5 + $0x98] sm:$0xff]  ;;  %v1300_v21 = vld [vmem:[#allocation5 + $0x50] sm:$0xff]  ;;  %s1534_s10 = scalar_lea.hbm %s1533_s1, 24  ;;  %p1539_p11 = scmp.lt.s32.totalorder %s1533_s1, %s1804_s5 }
  0x3b   : > { %757 = vmatpush.bf16.msra.mxu2 %v1312_v6  ;;  %v1318_v15 = vld [vmem:[#allocation5 + $0xe0] sm:$0xff]  ;;  %v1317_v19 = vld [vmem:[#allocation5 + $0xd8] sm:$0xff]  ;;  %v1308_v22 = vld [vmem:[#allocation5 + $0x90] sm:$0xff]  ;;  %p1535_p1 = scmp.ne.s32.totalorder %s1533_s1, %s1534_s10  ;;  %p1540_p9 = scmp.lt.s32.totalorder %s1538_s24, %s1534_s10 }
  0x3c   : > { %775 = vmatpush.bf16.msra.mxu3 %v1320_v7  ;;  %v1316_v23 = vld [vmem:[#allocation5 + $0xd0] sm:$0xff]  ;;  %v1291_v24 = vld [vmem:[#allocation5 + $0x8] sm:$0xff]  ;;  %v1290_v28 = vld [vmem:[#allocation5] sm:$0xff] }
  0x3d   : > { %722 = vmatpush.bf16.msra.mxu0 %v1295_v8  ;;  %v1299_v25 = vld [vmem:[#allocation5 + $0x48] sm:$0xff]  ;;  %v1298_v29 = vld [vmem:[#allocation5 + $0x40] sm:$0xff]  ;;  %v282_v32 = vld [vmem:[%s1728_s13] sm:$0xff]  ;;  %p1536_p4 = pnand %p1535_p1, %p1698_p7  ;;  %p1541_p2 = por %p1540_p9, %p1539_p11 }
  0x3e   : > { %740 = vmatpush.bf16.msra.mxu1 %v1303_v9  ;;  %v1307_v26 = vld [vmem:[#allocation5 + $0x88] sm:$0xff]  ;;  %v1306_v30 = vld [vmem:[#allocation5 + $0x80] sm:$0xff]  ;;  %v290_v35 = vld [vmem:[%s1728_s13 + $0x40] sm:$0xff] }
  0x3f   : > { %758 = vmatpush.bf16.msra.mxu2 %v1311_v10  ;;  %v1315_v27 = vld [vmem:[#allocation5 + $0xc8] sm:$0xff]  ;;  %v1314_v31 = vld [vmem:[#allocation5 + $0xc0] sm:$0xff]  ;;  %v1329_v39 = vld [vmem:[#allocation5 + $0x138] sm:$0xff]  ;;  %p1537_p8 = pneg %p1536_p4 }
  0x40   : > { %776 = vmatpush.bf16.msra.mxu3 %v1319_v11  ;;  %v289_v33 = vld [vmem:[%s1728_s13 + $0x38] sm:$0xff]  ;;  %v283_v34 = vld [vmem:[%s1728_s13 + $0x8] sm:$0xff]  ;;  %v284_v36 = vld [vmem:[%s1728_s13 + $0x10] sm:$0xff] }
  0x41   : > { %723 = vmatpush.bf16.msra.mxu0 %v1294_v12  ;;  %v291_v37 = vld [vmem:[%s1728_s13 + $0x48] sm:$0xff]  ;;  %v285_v40 = vld [vmem:[%s1728_s13 + $0x18] sm:$0xff]  ;;  %v292_v41 = vld [vmem:[%s1728_s13 + $0x50] sm:$0xff]  ;;  %v303_v42 = vpack.c.bf16 %v289_v33, %v282_v32  ;;  %v304_v43 = vpack.c.bf16 %v290_v35, %v283_v34  ;;  %p1542_p10 = pnand %p1541_p2, %p1537_p8 }
  0x42   : > { %741 = vmatpush.bf16.msra.mxu1 %v1302_v13  ;;  %v1338_v38 = vld [vmem:[#allocation5 + $0x180] sm:$0xff]  ;;  %v305_v44 = vpack.c.bf16 %v291_v37, %v284_v36  ;;  %v1337_v45 = vld [vmem:[#allocation5 + $0x178] sm:$0xff]  ;;  %v306_v46 = vpack.c.bf16 %v292_v41, %v285_v40  ;;  %v1328_v47 = vld [vmem:[#allocation5 + $0x130] sm:$0xff] }
  0x43   : > { %759 = vmatpush.bf16.msra.mxu2 %v1310_v14  ;;  %v1336_v48 = vld [vmem:[#allocation5 + $0x170] sm:$0xff]  ;;  %v1327_v49 = vld [vmem:[#allocation5 + $0x128] sm:$0xff]  ;;  %v1326_v51 = vld [vmem:[#allocation5 + $0x120] sm:$0xff] }
  0x44   : > { %777 = vmatpush.bf16.msra.mxu3 %v1318_v15  ;;  %v1335_v50 = vld [vmem:[#allocation5 + $0x168] sm:$0xff]  ;;  %v1334_v52 = vld [vmem:[#allocation5 + $0x160] sm:$0xff]  ;;  %v298_v55 = vld [vmem:[%s1728_s13 + $0x80] sm:$0xff] }
  0x45   : > { %724 = vmatpush.bf16.msra.mxu0 %v1293_v16  ;;  %v296_v53 = vld [vmem:[%s1728_s13 + $0x70] sm:$0xff]  ;;  %v297_v54 = vld [vmem:[%s1728_s13 + $0x78] sm:$0xff]  ;;  %v1325_v56 = vld [vmem:[#allocation5 + $0x118] sm:$0xff]  ;;  %v312_v60 = vpack.c.bf16 %v298_v55, %v298_v55 }
  0x46   : > { %742 = vmatpush.bf16.msra.mxu1 %v1301_v17  ;;  %v299_v57 = vld [vmem:[%s1728_s13 + $0x88] sm:$0xff]  ;;  %v310_v58 = vpack.c.bf16 %v296_v53, %v296_v53  ;;  %v311_v59 = vpack.c.bf16 %v297_v54, %v297_v54  ;;  %v1324_v63 = vld [vmem:[#allocation5 + $0x110] sm:$0xff]  ;;  %v1323_v1 = vld [vmem:[#allocation5 + $0x108] sm:$0xff] }
  0x47   : > { %760 = vmatpush.bf16.msra.mxu2 %v1309_v18  ;;  %v1333_v61 = vld [vmem:[#allocation5 + $0x158] sm:$0xff]  ;;  %v313_v62 = vpack.c.bf16 %v299_v57, %v299_v57  ;;  %v1332_v0 = vld [vmem:[#allocation5 + $0x150] sm:$0xff]  ;;  %v1331_v2 = vld [vmem:[#allocation5 + $0x148] sm:$0xff] }
  0x48   : > { %778 = vmatpush.bf16.msra.mxu3 %v1317_v19  ;;  %v1322_v3 = vld [vmem:[#allocation5 + $0x100] sm:$0xff]  ;;  %v286_v5 = vld [vmem:[%s1728_s13 + $0x20] sm:$0xff]  ;;  %v293_v6 = vld [vmem:[%s1728_s13 + $0x58] sm:$0xff] }
  0x49   : > { %725 = vmatpush.bf16.msra.mxu0 %v1292_v20  ;;  %v1330_v4 = vld [vmem:[#allocation5 + $0x140] sm:$0xff]  ;;  %v294_v8 = vld [vmem:[%s1728_s13 + $0x60] sm:$0xff]  ;;  %v307_v11 = vpack.c.bf16 %v293_v6, %v286_v5  ;;  %v301_v15 = vld [vmem:[%s1728_s13 + $0x98] sm:$0xff] }
  0x4a   : > { %743 = vmatpush.bf16.msra.mxu1 %v1300_v21  ;;  %v287_v7 = vld [vmem:[%s1728_s13 + $0x28] sm:$0xff]  ;;  %v288_v9 = vld [vmem:[%s1728_s13 + $0x30] sm:$0xff]  ;;  %v302_v16 = vld [vmem:[%s1728_s13 + $0xa0] sm:$0xff]  ;;  %v315_v18 = vpack.c.bf16 %v301_v15, %v301_v15 }
  0x4b   : > { %761 = vmatpush.bf16.msra.mxu2 %v1308_v22  ;;  %v295_v10 = vld [vmem:[%s1728_s13 + $0x68] sm:$0xff]  ;;  %v308_v12 = vpack.c.bf16 %v294_v8, %v287_v7  ;;  %v300_v14 = vld [vmem:[%s1728_s13 + $0x90] sm:$0xff]  ;;  %v316_v19 = vpack.c.bf16 %v302_v16, %v302_v16  ;;  %v1344_v22 = vld [vmem:[#allocation7 + $0x28] sm:$0xff] }
  0x4c   : > { %779 = vmatpush.bf16.msra.mxu3 %v1316_v23  ;;  %v309_v13 = vpack.c.bf16 %v295_v10, %v288_v9  ;;  %v314_v17 = vpack.c.bf16 %v300_v14, %v300_v14  ;;  %v1346_v20 = vld [vmem:[#allocation7 + $0x38] sm:$0xff]  ;;  %v1345_v21 = vld [vmem:[#allocation7 + $0x30] sm:$0xff]  ;;  %v1340_v32 = vld [vmem:[#allocation7 + $0x8] sm:$0xff] }
  0x4d   : > { %726 = vmatpush.bf16.msra.mxu0 %v1291_v24  ;;  %v1339_v37 = vld [vmem:[#allocation7] sm:$0xff] }
  0x4e   : > { %744 = vmatpush.bf16.msra.mxu1 %v1299_v25  ;;  %v1343_v25 = vld [vmem:[#allocation7 + $0x20] sm:$0xff] }
  0x4f   : > { %762 = vmatpush.bf16.msra.mxu2 %v1307_v26  ;;  %v1342_v26 = vld [vmem:[#allocation7 + $0x18] sm:$0xff] }
  0x50   : > { %780 = vmatpush.bf16.msra.mxu3 %v1315_v27 }
  0x51   : > { %727 = vmatpush.bf16.msra.mxu0 %v1290_v28 }
  0x52   : > { %745 = vmatpush.bf16.msra.mxu1 %v1298_v29 }
  0x53   : > { %763 = vmatpush.bf16.msra.mxu2 %v1306_v30 }
  0x54   : > { %781 = vmatpush.bf16.msra.mxu3 %v1314_v31  ;;  %728 = vmatmul.bf16.vlgmr.msra.gmra.mxu0 %v303_v42  ;;  %v1341_v31 = vld [vmem:[#allocation7 + $0x10] sm:$0xff] }
  0x55   : > { %792 = vmatpush.bf16.msrb.mxu0 %v1329_v39  ;;  %746 = vmatmul.bf16.vlgmr.msra.gmra.mxu1 %v304_v43 }
  0x56   : > { %764 = vmatmul.bf16.vlgmr.msra.gmra.mxu2 %v305_v44  ;;  %810 = vmatpush.bf16.msrb.mxu1 %v1337_v45 }
  0x57   : > { %835 = vmatpush.bf16.msrb.mxu2 %v1338_v38  ;;  %782 = vmatmul.bf16.vlgmr.msra.gmra.mxu3 %v306_v46  ;;  %v1426_v38 = vld [vmem:[%s1801_s2] ss:$0 sm:$0xff] }
  0x58   : > { %919 = vmatpush.bf16.msrb.mxu3 %v1346_v20 }
  0x59   : > { %793 = vmatpush.bf16.msrb.mxu0 %v1328_v47 }
  0x5a   : > { %811 = vmatpush.bf16.msrb.mxu1 %v1336_v48 }
  0x5c   : > { %920 = vmatpush.bf16.msrb.mxu3 %v1345_v21 }
  0x5d   : > { %794 = vmatpush.bf16.msrb.mxu0 %v1327_v49 }
  0x5e   : > { %812 = vmatpush.bf16.msrb.mxu1 %v1335_v50 }
  0x60   : > { %921 = vmatpush.bf16.msrb.mxu3 %v1344_v22 }
  0x61   : > { %795 = vmatpush.bf16.msrb.mxu0 %v1326_v51 }
  0x62   : > { %813 = vmatpush.bf16.msrb.mxu1 %v1334_v52 }
  0x64   : > { %733 = vmatmul.bf16.gmra.mxu0 %v310_v58  ;;  %922 = vmatpush.bf16.msrb.mxu3 %v1343_v25 }
  0x65   : > { %796 = vmatpush.bf16.msrb.mxu0 %v1325_v56  ;;  %751 = vmatmul.bf16.gmra.mxu1 %v311_v59 }
  0x66   : > { %769 = vmatmul.bf16.gmra.mxu2 %v312_v60  ;;  %814 = vmatpush.bf16.msrb.mxu1 %v1333_v61 }
  0x67   : > { %787 = vmatmul.bf16.gmra.mxu3 %v313_v62 }
  0x68   : > { %923 = vmatpush.bf16.msrb.mxu3 %v1342_v26 }
  0x69   : > { %797 = vmatpush.bf16.msrb.mxu0 %v1324_v63 }
  0x6a   : > { %815 = vmatpush.bf16.msrb.mxu1 %v1332_v0 }
  0x6c   : > { %924 = vmatpush.bf16.msrb.mxu3 %v1341_v31 }
  0x6d   : > { %798 = vmatpush.bf16.msrb.mxu0 %v1323_v1 }
  0x6e   : > { %816 = vmatpush.bf16.msrb.mxu1 %v1331_v2 }
  0x70   : > { %925 = vmatpush.bf16.msrb.mxu3 %v1340_v32 }
  0x71   : > { %799 = vmatpush.bf16.msrb.mxu0 %v1322_v3 }
  0x72   : > { %817 = vmatpush.bf16.msrb.mxu1 %v1330_v4 }
  0x74   : > { %800 = vmatmul.bf16.vlgmr.msrb.gmra.mxu0 %v307_v11  ;;  %926 = vmatpush.bf16.msrb.mxu3 %v1339_v37 }
  0x75   : > { %818 = vmatmul.bf16.vlgmr.msrb.gmra.mxu1 %v308_v12 }
  0x76   : > { %1253 = vmatmul.msk.bf16.vlgmr.msrb.gmra.mxu2 %vm713_vm0, %v309_v13 }
  0x84   : > { %805 = vmatmul.bf16.gmra.mxu0 %v314_v17 }
  0x85   : > { %823 = vmatmul.bf16.gmra.mxu1 %v315_v18 }
  0x86   : > { %1254 = vmatmul.msk.bf16.gmra.mxu2 %vm713_vm0, %v316_v19  ;;  %v1427_v19 = vld [vmem:[%s1803_s4] ss:$0 sm:$0xff] }
  0xd1   : > { %v729_v23 = vpop.f32.mrf.mxu0 }
  0xd2   : > { %v747_v24 = vpop.f32.mrf.mxu1  ;;  %v730_v43 = vadd.f32 %v1426_v38, %v729_v23 }
  0xd4   : > { %v748_v44 = vadd.f32 %v747_v24, %v730_v43 }
  0xd9   : > { %v765_v27 = vpop.f32.mrf.mxu2  ;;  %v731_v28 = vpop.f32.mrf.mxu0 }
  0xda   : > { %v749_v29 = vpop.f32.mrf.mxu1  ;;  %v783_v30 = vpop.f32.mrf.mxu3  ;;  %v732_v45 = vadd.f32 %v1426_v38, %v731_v28  ;;  %v766_v50 = vadd.f32 %v765_v27, %v748_v44 }
  0xdc   : > { %v750_v51 = vadd.f32 %v749_v29, %v732_v45  ;;  %v784_v53 = vadd.f32 %v783_v30, %v766_v50 }
  0xe1   : > { %v767_v33 = vpop.f32.mrf.mxu2  ;;  %v734_v34 = vpop.f32.mrf.mxu0 }
  0xe2   : > { %v752_v35 = vpop.f32.mrf.mxu1  ;;  %v785_v36 = vpop.f32.mrf.mxu3  ;;  %v768_v52 = vadd.f32 %v767_v33, %v750_v51  ;;  %v735_v55 = vadd.f32 %v1426_v38, %v734_v34 }
  0xe4   : > { %v786_v56 = vadd.f32 %v785_v36, %v768_v52  ;;  %v753_v61 = vadd.f32 %v752_v35, %v735_v55 }
  0xe9   : > { %v770_v39 = vpop.f32.mrf.mxu2  ;;  %v736_v40 = vpop.f32.mrf.mxu0 }
  0xea   : > { %v754_v41 = vpop.f32.mrf.mxu1  ;;  %v788_v42 = vpop.f32.mrf.mxu3  ;;  %v771_v2 = vadd.f32 %v770_v39, %v753_v61 }
  0xec   : > { %v789_v8 = vadd.f32 %v788_v42, %v771_v2 }
  0xf1   : > { %v772_v46 = vpop.f32.mrf.mxu2  ;;  %v801_v47 = vpop.f32.mrf.mxu0 }
  0xf2   : > { %v819_v48 = vpop.f32.mrf.mxu1  ;;  %v790_v49 = vpop.f32.mrf.mxu3  ;;  %v802_v57 = vadd.f32 %v801_v47, %v784_v53 }
  0xf4   : > { %v820_v62 = vadd.f32 %v819_v48, %v802_v57 }
  0xf9   : > { %v837_v54 = vpop.f32.mrf.mxu2  ;;  %v803_v58 = vpop.f32.mrf.mxu0 }
  0xfa   : > { %v821_v59 = vpop.f32.mrf.mxu1  ;;  %v804_v60 = vadd.f32 %v803_v58, %v786_v56  ;;  %v838_v63 = vadd.f32 %v837_v54, %v820_v62 }
  0xfc   : > { %v822_v0 = vadd.f32 %v821_v59, %v804_v60  ;;  %v846_v6 = vmax.f32 %v838_v63, 0.0 }
 0x101   : > { %v839_v1 = vpop.f32.mrf.mxu2  ;;  %v806_v4 = vpop.f32.mrf.mxu0 }
 0x102   : > { %v840_v3 = vadd.f32 %v839_v1, %v822_v0  ;;  %v824_v5 = vpop.f32.mrf.mxu1  ;;  %v807_v10 = vadd.f32 %v806_v4, %v789_v8 }
 0x104   : > { %v847_v7 = vmax.f32 %v840_v3, 0.0  ;;  %v825_v14 = vadd.f32 %v824_v5, %v807_v10 }
 0x106   : > { %v849_v9 = vpack.c.bf16 %v847_v7, %v846_v6 }
 0x108   : > { %927 = vmatmul.bf16.vlgmr.msrb.gmra.mxu3 %v849_v9 }
 0x109   : > { %v842_v11 = vpop.f32.mrf.mxu2  ;;  %v808_v12 = vpop.f32.mrf.mxu0 }
 0x10a   : > { %v826_v13 = vpop.f32.mrf.mxu1  ;;  %v843_v15 = vadd.f32 %v842_v11, %v825_v14 }
 0x10c   : > { %v848_v17 = vmax.f32 %v843_v15, 0.0 }
 0x10e   : > { %v850_v18 = vpack.c.bf16 %v848_v17, %v848_v17 }
 0x111   : > { %v844_v16 = vpop.f32.mrf.mxu2 }
 0x118   : > { %932 = vmatmul.bf16.gmra.mxu3 %v850_v18 }
 0x18b   : > { %v928_v20 = vpop.f32.mrf.mxu3 }
 0x18c   : > { %v929_v21 = vadd.f32 %v1427_v19, %v928_v20 }
 0x18e   : > { %937 = vst [vmem:[%s278_s12] sm:$0xff] %v929_v21 }
 0x193   : > { %v930_v22 = vpop.f32.mrf.mxu3 }
 0x194   : > { %v931_v23 = vadd.f32 %v1427_v19, %v930_v22 }
 0x196   : > { %938 = vst [vmem:[%s278_s12 + $0x8] sm:$0xff] %v931_v23 }
 0x19b   : > { %v933_v24 = vpop.f32.mrf.mxu3 }
 0x19c   : > { %v934_v25 = vadd.f32 %v1427_v19, %v933_v24 }
 0x19e   : > { %939 = vst [vmem:[%s278_s12 + $0x10] sm:$0xff] %v934_v25 }
 0x19f   : > { %1545 = shalt.err (!%p1542_p10)
}
 0x1a0   : > { %s1596_s7 = smov 128   ;;  %s1597_s9 = smov 8  }
 0x1a1   : > { %1362 = dma.vmem_to_hbm [thread:$0]  (%p1698_p7), %s954_s6, 384, %s956_s26, %s941_s28, %s1596_s7, %s1596_s7, %s1597_s9  }
 0x1a3   : > { %v935_v26 = vpop.f32.mrf.mxu3 }
 0x1a4 PF: > { %s970_s11 = sand.u32 1, %s1576_s18   ;;  %p1812_p12 = scmp.ge.s32.totalorder %s1588_s21, 2 }
 0x1a5   : > { %s971_s12 = scalar_lea.sflag [#allocation4], %s970_s11 }
 0x1a6   : > { %p1376_p13 = pnand %p1812_p12, %p1663_p6 }
 0x1a8   : > { %p1377_p0 = pneg %p1376_p13 }
 0x1aa   : > { %1571 = dma.done.wait (%p1377_p0), %s971_s12, 384  }
 0x1ab   : > { %1573 = vsyncadd (%p1377_p0), %s971_s12, 4294966912  ;;  %p19_p3 = scmp.ge.s32.totalorder %s1684_s14, 4   ;;  %s1813_s18 = smov %s1580_s19 }
 0x1ac   : > { %s1814_s19 = smov %s1584_s20  ;;  %s1815_s20 = smov %s1694_s17 }
 0x1ad   : > { %s1816_s21 = smov %s1684_s14  ;;  %21 = sbr.rel (!%p19_p3) target bundleno = 8 (0x8), region = 93 }
 0x1b2   :  { %977 = vsyncpa [#allocation3], 1 }
 0x1b3   :  { %979 = vsyncpa [#allocation3 + $0x1], 1 }
 0x1b4   :  { %980 = vsyncpa [#allocation6], 1 }
 0x1b5   :  { %981 = vsyncpa [#allocation4], 1 }
 0x1b6   :  { %983 = vsyncpa [#allocation4 + $0x1], 1 }

</bundles_post_ra>
